<compile_context>
chip_gen: v7x
topology: tpu7x:2x2x1
jax: 0.10.0
libtpu: 0.0.40
codegen_flags: <defaults>
</compile_context>

<pallas_src>
import jax
import jax.numpy as jnp
from jax.experimental import pallas as pl
from jax.experimental.pallas import tpu as pltpu

LANE = 128  # TPU vreg lane width


def _round_up(n, m):
    return ((n + m - 1) // m) * m


def dqn_kernel(x_ref, w1_ref, b1_ref, w2_ref, b2_ref, out_ref):
    # fc1: (TB, In) @ (In, H) -> f32 acc on MXU; bias + ReLU in f32 on VPU.
    x = x_ref[...].astype(w1_ref.dtype)
    h = jnp.dot(x, w1_ref[...], preferred_element_type=jnp.float32)
    h = jnp.maximum(h + b1_ref[...], 0.0)
    # fc2: (TB, H) @ (H, Op) -> f32 acc; bias in f32; lane-dense (128-wide) store.
    o = jnp.dot(h.astype(w2_ref.dtype), w2_ref[...],
                preferred_element_type=jnp.float32)
    out_ref[...] = (o + b2_ref[...]).astype(out_ref.dtype)


def prepare_dqn_params(w1, b1, w2, b2, *, compute_dtype=jnp.float32):
    """One-time param prep: lane-pad ONLY the output feature dim to 128.

    Hidden dim is left unpadded.  Weights are stored in `compute_dtype`
    (bf16 recommended on v6e/v7x once the net scales); biases stay f32.
    Returns (params_tuple, out_features).
    """
    Out = w2.shape[1]
    Op = _round_up(Out, LANE)
    w2p = jnp.pad(w2, ((0, 0), (0, Op - Out)))
    b2p = jnp.pad(b2, ((0, 0), (0, Op - Out)))
    params = (
        w1.astype(compute_dtype),
        b1.astype(jnp.float32),
        w2p.astype(compute_dtype),
        b2p.astype(jnp.float32),
    )
    return params, Out


def dqn_forward_padded(x, params, *, block_b=512, multi_tile_min_batch=1024):
    """Fused DQN forward.  Returns the lane-dense padded output (Bp, Op).

    Padded action lanes are exactly 0 (from b2's zero padding on zero matmul
    columns), so argmax / Q-gather consumers can read this slab directly.
    """
    w1, b1, w2p, b2p = params
    B, In = x.shape
    H = w1.shape[1]
    Op = w2p.shape[1]

    # Single grid step for replay-sized batches; only tile (and shard across the
    # 2 TensorCores on v7x) when the batch is large enough to amortize it.
    if B >= multi_tile_min_batch:
        TB = _round_up(min(block_b, B), 8)
    else:
        TB = _round_up(B, 8)
    Bp = _round_up(B, TB)

    xp = x if Bp == B else jnp.pad(x, ((0, Bp - B), (0, 0)))

    grid = (Bp // TB,)

    out_padded = pl.pallas_call(
        dqn_kernel,
        out_shape=jax.ShapeDtypeStruct((Bp, Op), x.dtype),
        grid=grid,
        in_specs=[
            # x: tiled along batch only (single tile in the common case).
            pl.BlockSpec((TB, In), lambda i: (i, 0)),
            # Weights/biases: constant index_map -> fetched once, VMEM-resident.
            pl.BlockSpec((In, H), lambda i: (0, 0)),
            pl.BlockSpec((1, H), lambda i: (0, 0)),
            pl.BlockSpec((H, Op), lambda i: (0, 0)),
            pl.BlockSpec((1, Op), lambda i: (0, 0)),
        ],
        # Lane-dense (multiple-of-128) output slab per batch tile.
        out_specs=pl.BlockSpec((TB, Op), lambda i: (i, 0)),
        compiler_params=pltpu.CompilerParams(
            # Independent batch tiles: no-op for grid=(1,), shards across both
            # TensorCores on v7x once the batch is large enough to be tiled.
            dimension_semantics=("parallel",),
        ),
    )(xp, w1, b1, w2p, b2p)

    return out_padded


def dqn_forward(x, params, out_features, **kwargs):
    """nn.Module-equivalent forward: returns (B, out_features) Q-values.

    The trailing slice is a separate XLA op; consumers that can work on the
    padded slab should call dqn_forward_padded directly.
    """
    out_padded = dqn_forward_padded(x, params, **kwargs)
    return out_padded[: x.shape[0], :out_features]


def init_dqn_params(key, input_size, hidden_size, output_size):
    """Deterministic init mimicking nn.Linear's default U(-1/sqrt(fan_in), ...)."""
    k1, k2, k3, k4 = jax.random.split(key, 4)
    bound1 = 1.0 / (input_size ** 0.5)
    bound2 = 1.0 / (hidden_size ** 0.5)
    w1 = jax.random.uniform(k1, (input_size, hidden_size), jnp.float32, -bound1, bound1)
    b1 = jax.random.uniform(k2, (1, hidden_size), jnp.float32, -bound1, bound1)
    w2 = jax.random.uniform(k3, (hidden_size, output_size), jnp.float32, -bound2, bound2)
    b2 = jax.random.uniform(k4, (1, output_size), jnp.float32, -bound2, bound2)
    return w1, b1, w2, b2


if __name__ == "__main__":
    # Replay-batch-sized call, small network: DQN with 16-dim states, 32 hidden
    # units, 4 actions.
    batch, input_size, hidden_size, output_size = 256, 16, 32, 4

    key = jax.random.PRNGKey(0)
    kx, kp = jax.random.split(key)
    x = jax.random.normal(kx, (batch, input_size), jnp.float32)
    w1, b1, w2, b2 = init_dqn_params(kp, input_size, hidden_size, output_size)

    # One-time param preparation (padding hoisted out of the per-call path).
    params, out_feats = prepare_dqn_params(w1, b1, w2, b2)

    out = dqn_forward(x, params, out_feats)
    out = jax.block_until_ready(out)

    # Pure-JAX reference of the same math.
    ref = jnp.maximum(x @ w1 + b1, 0.0) @ w2 + b2
    assert out.shape == (batch, output_size)
    assert jnp.allclose(out, ref, atol=1e-5, rtol=1e-5)

    # Padded-slab path: padded action lanes must be exactly 0.
    out_pad = jax.block_until_ready(dqn_forward_padded(x, params))
    assert out_pad.shape == (256, 128)
    assert jnp.allclose(out_pad[:, :output_size], ref, atol=1e-5, rtol=1e-5)
    assert jnp.all(out_pad[:, output_size:] == 0.0)

    # Tiny, non-8-aligned batch (exercises the batch-pad path).
    out_small = jax.block_until_ready(dqn_forward(x[:5], params, out_feats))
    ref_small = jnp.maximum(x[:5] @ w1 + b1, 0.0) @ w2 + b2
    assert out_small.shape == (5, output_size)
    assert jnp.allclose(out_small, ref_small, atol=1e-5, rtol=1e-5)

    print("KERNEL_OK")
</pallas_src>

<mosaic_0001>
module attributes {stable_mosaic.version = 11 : i64} {
  func.func @dqn_kernel(%arg0: i32, %arg1: memref<256x16xf32, #tpu.memory_space<vmem>>, %arg2: memref<16x32xf32, #tpu.memory_space<vmem>>, %arg3: memref<1x32xf32, #tpu.memory_space<vmem>>, %arg4: memref<32x128xf32, #tpu.memory_space<vmem>>, %arg5: memref<1x128xf32, #tpu.memory_space<vmem>>, %arg6: memref<256x128xf32, #tpu.memory_space<vmem>>) attributes {dimension_semantics = [#tpu.dimension_semantics<parallel>], iteration_bounds = array<i64: 1>, scalar_prefetch = 0 : i64, scratch_operands = 0 : i64, tpu.core_type = #tpu.core_type<tc>, window_params = [{transform_indices = @transform_0, window_bounds = array<i64: 256, 16>}, {pipeline_mode = #tpu.pipeline_mode<synchronous>, transform_indices = @transform_1, window_bounds = array<i64: 16, 32>}, {pipeline_mode = #tpu.pipeline_mode<synchronous>, transform_indices = @transform_2, window_bounds = array<i64: 1, 32>}, {pipeline_mode = #tpu.pipeline_mode<synchronous>, transform_indices = @transform_3, window_bounds = array<i64: 32, 128>}, {pipeline_mode = #tpu.pipeline_mode<synchronous>, transform_indices = @transform_4, window_bounds = array<i64: 1, 128>}, {transform_indices = @transform_5, window_bounds = array<i64: 256, 128>}]} {
    %c0 = arith.constant 0 : index
    %c0_0 = arith.constant 0 : index
    %0 = vector.load %arg1[%c0, %c0_0] : memref<256x16xf32, #tpu.memory_space<vmem>>, vector<256x16xf32>
    %c0_1 = arith.constant 0 : index
    %c0_2 = arith.constant 0 : index
    %1 = vector.load %arg2[%c0_1, %c0_2] : memref<16x32xf32, #tpu.memory_space<vmem>>, vector<16x32xf32>
    %cst = arith.constant dense<0.000000e+00> : vector<256x32xf32>
    %2 = tpu.matmul %0, %1, %cst {dimension_numbers = #tpu.dot_dimension_numbers<[1], [0], [0], [1], [0, 0, 1, 1], [], []>} : vector<256x16xf32>, vector<16x32xf32>, vector<256x32xf32> -> vector<256x32xf32>
    %c0_3 = arith.constant 0 : index
    %c0_4 = arith.constant 0 : index
    %3 = vector.load %arg3[%c0_3, %c0_4] : memref<1x32xf32, #tpu.memory_space<vmem>>, vector<1x32xf32>
    %4 = vector.broadcast %3 : vector<1x32xf32> to vector<256x32xf32>
    %5 = arith.addf %2, %4 : vector<256x32xf32>
    %cst_5 = arith.constant 0.000000e+00 : f32
    %6 = vector.broadcast %cst_5 : f32 to vector<256x32xf32>
    %7 = arith.maximumf %5, %6 : vector<256x32xf32>
    %c0_6 = arith.constant 0 : index
    %c0_7 = arith.constant 0 : index
    %8 = vector.load %arg4[%c0_6, %c0_7] : memref<32x128xf32, #tpu.memory_space<vmem>>, vector<32x128xf32>
    %cst_8 = arith.constant dense<0.000000e+00> : vector<256x128xf32>
    %9 = tpu.matmul %7, %8, %cst_8 {dimension_numbers = #tpu.dot_dimension_numbers<[1], [0], [0], [1], [0, 0, 1, 1], [], []>} : vector<256x32xf32>, vector<32x128xf32>, vector<256x128xf32> -> vector<256x128xf32>
    %c0_9 = arith.constant 0 : index
    %c0_10 = arith.constant 0 : index
    %10 = vector.load %arg5[%c0_9, %c0_10] : memref<1x128xf32, #tpu.memory_space<vmem>>, vector<1x128xf32>
    %11 = vector.broadcast %10 : vector<1x128xf32> to vector<256x128xf32>
    %12 = arith.addf %9, %11 : vector<256x128xf32>
    %c0_11 = arith.constant 0 : index
    %c0_12 = arith.constant 0 : index
    %13 = vector.load %arg6[%c0_11, %c0_12] : memref<256x128xf32, #tpu.memory_space<vmem>>, vector<256x128xf32>
    tpu.vector_store %arg6[%c0_11, %c0_12], %12 {strides = array<i32>} : memref<256x128xf32, #tpu.memory_space<vmem>>, vector<256x128xf32>,
    return
  }
  func.func @transform_0(%arg0: i32) -> (i32, i32) {
    %c0_i32 = arith.constant 0 : i32
    %c0_i32_0 = arith.constant 0 : i32
    return %arg0, %c0_i32 : i32, i32
  }
  func.func @transform_1(%arg0: i32) -> (i32, i32) {
    %c0_i32 = arith.constant 0 : i32
    %c0_i32_0 = arith.constant 0 : i32
    %c0_i32_1 = arith.constant 0 : i32
    return %c0_i32, %c0_i32_0 : i32, i32
  }
  func.func @transform_2(%arg0: i32) -> (i32, i32) {
    %c0_i32 = arith.constant 0 : i32
    %c0_i32_0 = arith.constant 0 : i32
    %c0_i32_1 = arith.constant 0 : i32
    return %c0_i32, %c0_i32_0 : i32, i32
  }
  func.func @transform_3(%arg0: i32) -> (i32, i32) {
    %c0_i32 = arith.constant 0 : i32
    %c0_i32_0 = arith.constant 0 : i32
    %c0_i32_1 = arith.constant 0 : i32
    return %c0_i32, %c0_i32_0 : i32, i32
  }
  func.func @transform_4(%arg0: i32) -> (i32, i32) {
    %c0_i32 = arith.constant 0 : i32
    %c0_i32_0 = arith.constant 0 : i32
    %c0_i32_1 = arith.constant 0 : i32
    return %c0_i32, %c0_i32_0 : i32, i32
  }
  func.func @transform_5(%arg0: i32) -> (i32, i32) {
    %c0_i32 = arith.constant 0 : i32
    %c0_i32_0 = arith.constant 0 : i32
    return %arg0, %c0_i32 : i32, i32
  }
}

</mosaic_0001>

<bundles_post_ra>
// kernel: tpu_custom_call.1
= control target key start
LH: loop header
LB: loop body
LE: loop exit
PB: predicated region body
PF: predicated region fallthrough
CT: control target
= control target key end

     0   :  { %vm62_vm0 = vcmask 130048   ;;  %s1377_s0 = inlined_call_operand.vmem [shape: f32[256,16], index: 0, kind: input, shape index: {}]   ;;  %s1378_s1 = inlined_call_operand.vmem [shape: f32[16,32], index: 1, kind: input, shape index: {}]   ;;  %s1379_s2 = inlined_call_operand.vmem [shape: f32[1,32], index: 2, kind: input, shape index: {}]   ;;  %s1380_s3 = inlined_call_operand.vmem [shape: f32[32,128], index: 3, kind: input, shape index: {}]   ;;  %s1381_s4 = inlined_call_operand.vmem [shape: f32[1,128], index: 4, kind: input, shape index: {}]   ;;  %s1382_s5 = inlined_call_operand.hbm [shape: f32[256,128], index: 5, kind: output, shape index: {}]  }
   0x1   :  { %v53_v0 = vld [vmem:[%s1378_s1] sm:$0xff]  ;;  %v54_v1 = vld [vmem:[%s1378_s1 + $0x8] sm:$0xff]  ;;  %v23_v5 = vld [vmem:[%s1377_s0 + $0x10] sm:$0xff] }
   0x2   :  { %v21_v2 = vld [vmem:[%s1377_s0] sm:$0xff]  ;;  %v1041_v3 = vpack.c.bf16 %v54_v1, %v53_v0  ;;  %v22_v4 = vld [vmem:[%s1377_s0 + $0x8] sm:$0xff]  ;;  %v24_v6 = vld [vmem:[%s1377_s0 + $0x18] sm:$0xff] }
   0x3   :  { %937 = vmatprep.mubr.msk.f32.mxu0 %vm62_vm0, %v21_v2  ;;  %v25_v7 = vld [vmem:[%s1377_s0 + $0x20] sm:$0xff]  ;;  %v417_v9 = vld [vmem:[%s1380_s3 + $0x8] sm:$0xff] }
   0x4   :  { %1042 = vmatprep.subr.bf16.mxu0 %v1041_v3  ;;  %v416_v8 = vld [vmem:[%s1380_s3] sm:$0xff]  ;;  %v26_v10 = vld [vmem:[%s1377_s0 + $0x28] sm:$0xff] }
   0x5   :  { %1044 = vmatpush3.bf16.msra.mxu0 %v1041_v3  ;;  %v1045_v11 = vpack.c.bf16 %v417_v9, %v416_v8 }
   0x8   :  { %938 = vmatmul.mubr.msk.f32.vlgmr.msra.gmra.mrb[0].mxu0 %vm62_vm0, %v22_v4 }
   0x9   :  { %940 = vmatprep.mubr.msk.f32.mxu0 %vm62_vm0, %v23_v5 }
   0xc   :  { %941 = vmatmul.mubr.msk.f32.gmra.mrb[2].mxu0 %vm62_vm0, %v24_v6 }
   0xd   :  { %943 = vmatprep.mubr.msk.f32.mxu0 %vm62_vm0, %v25_v7 }
   0xe   :  { %10 = vsyncpa [#allocation3], 0  ;;  %v27_v12 = vld [vmem:[%s1377_s0 + $0x30] sm:$0xff]  ;;  %1046 = vmatprep.subr.bf16.mxu1 %v1045_v11  ;;  %v28_v13 = vld [vmem:[%s1377_s0 + $0x38] sm:$0xff]  ;;  %vm427_vm1 = vcmask 261120  }
   0xf   :  { %1048 = vmatpush3.bf16.msra.mxu1 %v1045_v11  ;;  %v29_v14 = vld [vmem:[%s1377_s0 + $0x40] sm:$0xff]  ;;  %v30_v15 = vld [vmem:[%s1377_s0 + $0x48] sm:$0xff]  ;;  %v31_v16 = vld [vmem:[%s1377_s0 + $0x50] sm:$0xff] }
  0x10   :  { %944 = vmatmul.mubr.msk.f32.gmra.mrb[4].mxu0 %vm62_vm0, %v26_v10  ;;  %v32_v17 = vld [vmem:[%s1377_s0 + $0x58] sm:$0xff]  ;;  %v33_v18 = vld [vmem:[%s1377_s0 + $0x60] sm:$0xff]  ;;  %v34_v19 = vld [vmem:[%s1377_s0 + $0x68] sm:$0xff] }
  0x11   :  { %946 = vmatprep.mubr.msk.f32.mxu0 %vm62_vm0, %v27_v12  ;;  %v35_v20 = vld [vmem:[%s1377_s0 + $0x70] sm:$0xff]  ;;  %v36_v21 = vld [vmem:[%s1377_s0 + $0x78] sm:$0xff]  ;;  %v37_v22 = vld [vmem:[%s1377_s0 + $0x80] sm:$0xff] }
  0x12   :  { %v38_v23 = vld [vmem:[%s1377_s0 + $0x88] sm:$0xff]  ;;  %v39_v24 = vld [vmem:[%s1377_s0 + $0x90] sm:$0xff]  ;;  %v40_v25 = vld [vmem:[%s1377_s0 + $0x98] sm:$0xff] }
  0x13   :  { %v41_v26 = vld [vmem:[%s1377_s0 + $0xa0] sm:$0xff]  ;;  %v42_v27 = vld [vmem:[%s1377_s0 + $0xa8] sm:$0xff]  ;;  %v43_v28 = vld [vmem:[%s1377_s0 + $0xb0] sm:$0xff] }
  0x14   :  { %947 = vmatmul.mubr.msk.f32.gmra.mrb[6].mxu0 %vm62_vm0, %v28_v13  ;;  %v44_v29 = vld [vmem:[%s1377_s0 + $0xb8] sm:$0xff]  ;;  %v45_v30 = vld [vmem:[%s1377_s0 + $0xc0] sm:$0xff]  ;;  %v46_v31 = vld [vmem:[%s1377_s0 + $0xc8] sm:$0xff] }
  0x15   :  { %949 = vmatprep.mubr.msk.f32.mxu0 %vm62_vm0, %v29_v14  ;;  %v47_v32 = vld [vmem:[%s1377_s0 + $0xd0] sm:$0xff]  ;;  %v48_v33 = vld [vmem:[%s1377_s0 + $0xd8] sm:$0xff]  ;;  %v49_v34 = vld [vmem:[%s1377_s0 + $0xe0] sm:$0xff] }
  0x16   :  { %v50_v35 = vld [vmem:[%s1377_s0 + $0xe8] sm:$0xff]  ;;  %v51_v36 = vld [vmem:[%s1377_s0 + $0xf0] sm:$0xff]  ;;  %v52_v37 = vld [vmem:[%s1377_s0 + $0xf8] sm:$0xff] }
  0x17   :  { %v418_v38 = vld [vmem:[%s1380_s3 + $0x10] sm:$0xff]  ;;  %v419_v39 = vld [vmem:[%s1380_s3 + $0x18] sm:$0xff]  ;;  %v1262_v41 = vld [vmem:[%s1379_s2] ss:$0 sm:$0xff]  ;;  %s1080_s3 = smov [#allocation2]  }
  0x18   :  { %950 = vmatmul.mubr.msk.f32.gmra.mrb[8].mxu0 %vm62_vm0, %v30_v15  ;;  %v1049_v40 = vpack.c.bf16 %v419_v39, %v418_v38 }
  0x19   :  { %952 = vmatprep.mubr.msk.f32.mxu0 %vm62_vm0, %v31_v16 }
  0x1a   :  { %1050 = vmatprep.subr.bf16.mxu1 %v1049_v40 }
  0x1b   :  { %1052 = vmatpush3.bf16.msra.mxu1 %v1049_v40 }
  0x1c   :  { %953 = vmatmul.mubr.msk.f32.gmra.mrb[10].mxu0 %vm62_vm0, %v32_v17 }
  0x1d   :  { %955 = vmatprep.mubr.msk.f32.mxu0 %vm62_vm0, %v33_v18 }
  0x20   :  { %956 = vmatmul.mubr.msk.f32.gmra.mrb[12].mxu0 %vm62_vm0, %v34_v19 }
  0x21   :  { %958 = vmatprep.mubr.msk.f32.mxu0 %vm62_vm0, %v35_v20 }
  0x24   :  { %959 = vmatmul.mubr.msk.f32.gmra.mrb[14].mxu0 %vm62_vm0, %v36_v21 }
  0x25   :  { %961 = vmatprep.mubr.msk.f32.mxu0 %vm62_vm0, %v37_v22 }
  0x28   :  { %962 = vmatmul.mubr.msk.f32.gmra.mrb[16].mxu0 %vm62_vm0, %v38_v23 }
  0x29   :  { %964 = vmatprep.mubr.msk.f32.mxu0 %vm62_vm0, %v39_v24 }
  0x2c   :  { %965 = vmatmul.mubr.msk.f32.gmra.mrb[18].mxu0 %vm62_vm0, %v40_v25 }
  0x2d   :  { %967 = vmatprep.mubr.msk.f32.mxu0 %vm62_vm0, %v41_v26 }
  0x30   :  { %968 = vmatmul.mubr.msk.f32.gmra.mrb[20].mxu0 %vm62_vm0, %v42_v27 }
  0x31   :  { %970 = vmatprep.mubr.msk.f32.mxu0 %vm62_vm0, %v43_v28 }
  0x34   :  { %971 = vmatmul.mubr.msk.f32.gmra.mrb[22].mxu0 %vm62_vm0, %v44_v29 }
  0x35   :  { %973 = vmatprep.mubr.msk.f32.mxu0 %vm62_vm0, %v45_v30 }
  0x38   :  { %974 = vmatmul.mubr.msk.f32.gmra.mrb[24].mxu0 %vm62_vm0, %v46_v31 }
  0x39   :  { %976 = vmatprep.mubr.msk.f32.mxu0 %vm62_vm0, %v47_v32 }
  0x3c   :  { %977 = vmatmul.mubr.msk.f32.gmra.mrb[26].mxu0 %vm62_vm0, %v48_v33 }
  0x3d   :  { %979 = vmatprep.mubr.msk.f32.mxu0 %vm62_vm0, %v49_v34 }
  0x40   :  { %980 = vmatmul.mubr.msk.f32.gmra.mrb[28].mxu0 %vm62_vm0, %v50_v35 }
  0x41   :  { %982 = vmatprep.mubr.msk.f32.mxu0 %vm62_vm0, %v51_v36 }
  0x44   :  { %983 = vmatmul.mubr.msk.f32.gmra.mrb[30].mxu0 %vm62_vm0, %v52_v37 }
  0xdb   :  { %v939_v42 = vpop.f32.mrb[0].mxu0 }
  0xdc   :  { %v231_v43 = vadd.f32 %v939_v42, %v1262_v41  ;;  %v225_v44 = vpop.f32.mrb[1].mxu0 }
  0xdd   :  { %v226_v45 = vadd.f32 %v1262_v41, %v225_v44 }
  0xde   :  { %v385_v48 = vmax.f32 %v231_v43, 0.0 }
  0xdf   :  { %v384_v46 = vmax.f32 %v226_v45, 0.0  ;;  %v942_v47 = vpop.f32.mrb[2].mxu0 }
  0xe0   :  { %v241_v49 = vadd.f32 %v942_v47, %v1262_v41  ;;  %v235_v50 = vpop.f32.mrb[3].mxu0 }
  0xe1   :  { %v236_v51 = vadd.f32 %v1262_v41, %v235_v50  ;;  %993 = vmatprep.mubr.msk.f32.mxu1 %vm427_vm1, %v384_v46 }
  0xe2   :  { %994 = vmatmul.mubr.msk.f32.vlgmr.msra.gmra.mrb[0].mxu1 %vm427_vm1, %v385_v48  ;;  %v387_v54 = vmax.f32 %v241_v49, 0.0 }
  0xe3   :  { %v386_v52 = vmax.f32 %v236_v51, 0.0  ;;  %v945_v53 = vpop.f32.mrb[4].mxu0 }
  0xe4   :  { %v251_v55 = vadd.f32 %v945_v53, %v1262_v41  ;;  %v245_v56 = vpop.f32.mrb[5].mxu0 }
  0xe5   :  { %v246_v57 = vadd.f32 %v1262_v41, %v245_v56  ;;  %996 = vmatprep.mubr.msk.f32.mxu1 %vm427_vm1, %v386_v52 }
  0xe6   :  { %997 = vmatmul.mubr.msk.f32.gmra.mrb[2].mxu1 %vm427_vm1, %v387_v54  ;;  %v389_v60 = vmax.f32 %v251_v55, 0.0 }
  0xe7   :  { %v388_v58 = vmax.f32 %v246_v57, 0.0  ;;  %v948_v59 = vpop.f32.mrb[6].mxu0 }
  0xe8   :  { %v261_v61 = vadd.f32 %v948_v59, %v1262_v41  ;;  %v255_v62 = vpop.f32.mrb[7].mxu0 }
  0xe9   :  { %v256_v63 = vadd.f32 %v1262_v41, %v255_v62  ;;  %999 = vmatprep.mubr.msk.f32.mxu1 %vm427_vm1, %v388_v58 }
  0xea   :  { %1000 = vmatmul.mubr.msk.f32.gmra.mrb[4].mxu1 %vm427_vm1, %v389_v60  ;;  %v391_v2 = vmax.f32 %v261_v61, 0.0 }
  0xeb   :  { %v390_v0 = vmax.f32 %v256_v63, 0.0  ;;  %v951_v1 = vpop.f32.mrb[8].mxu0 }
  0xec   :  { %v271_v3 = vadd.f32 %v951_v1, %v1262_v41  ;;  %v265_v4 = vpop.f32.mrb[9].mxu0 }
  0xed   :  { %v266_v5 = vadd.f32 %v1262_v41, %v265_v4  ;;  %1002 = vmatprep.mubr.msk.f32.mxu1 %vm427_vm1, %v390_v0 }
  0xee   :  { %1003 = vmatmul.mubr.msk.f32.gmra.mrb[6].mxu1 %vm427_vm1, %v391_v2  ;;  %v393_v8 = vmax.f32 %v271_v3, 0.0 }
  0xef   :  { %v392_v6 = vmax.f32 %v266_v5, 0.0  ;;  %v954_v7 = vpop.f32.mrb[10].mxu0 }
  0xf0   :  { %v281_v9 = vadd.f32 %v954_v7, %v1262_v41  ;;  %v275_v10 = vpop.f32.mrb[11].mxu0 }
  0xf1   :  { %v276_v11 = vadd.f32 %v1262_v41, %v275_v10  ;;  %1005 = vmatprep.mubr.msk.f32.mxu1 %vm427_vm1, %v392_v6 }
  0xf2   :  { %1006 = vmatmul.mubr.msk.f32.gmra.mrb[8].mxu1 %vm427_vm1, %v393_v8  ;;  %v395_v14 = vmax.f32 %v281_v9, 0.0 }
  0xf3   :  { %v394_v12 = vmax.f32 %v276_v11, 0.0  ;;  %v957_v13 = vpop.f32.mrb[12].mxu0  ;;  %v1331_v11 = vld [vmem:[%s1381_s4] ss:$0 sm:$0xff]  ;;  %s786_s4 = sshll.u32 %s1080_s3, 4  ;;  %s787_s4 = int_to_ptr.vmem [resolvable:$true] %s786_s4 }
  0xf4   :  { %v291_v15 = vadd.f32 %v957_v13, %v1262_v41  ;;  %v285_v16 = vpop.f32.mrb[13].mxu0  ;;  %s1056_s18 = scalar_lea.vmem %s787_s4, 4096  ;;  %p1061_p1 = scmp.lt.s32.totalorder %s787_s4, %s787_s4 }
  0xf5   :  { %v286_v17 = vadd.f32 %v1262_v41, %v285_v16  ;;  %1008 = vmatprep.mubr.msk.f32.mxu1 %vm427_vm1, %v394_v12  ;;  %p1057_p0 = scmp.ne.s32.totalorder %s787_s4, %s1056_s18  ;;  %p1062_p2 = scmp.lt.s32.totalorder %s1056_s18, %s1056_s18 }
  0xf6   :  { %1009 = vmatmul.mubr.msk.f32.gmra.mrb[10].mxu1 %vm427_vm1, %v395_v14  ;;  %v397_v20 = vmax.f32 %v291_v15, 0.0 }
  0xf7   :  { %v396_v18 = vmax.f32 %v286_v17, 0.0  ;;  %v960_v19 = vpop.f32.mrb[14].mxu0  ;;  %p1063_p3 = por %p1062_p2, %p1061_p1 }
  0xf8   :  { %v301_v21 = vadd.f32 %v960_v19, %v1262_v41  ;;  %v295_v22 = vpop.f32.mrb[15].mxu0 }
  0xf9   :  { %v296_v23 = vadd.f32 %v1262_v41, %v295_v22  ;;  %1011 = vmatprep.mubr.msk.f32.mxu1 %vm427_vm1, %v396_v18  ;;  %p1064_p4 = pnand %p1063_p3, %p1057_p0 }
  0xfa   :  { %1012 = vmatmul.mubr.msk.f32.gmra.mrb[12].mxu1 %vm427_vm1, %v397_v20  ;;  %v399_v26 = vmax.f32 %v301_v21, 0.0 }
  0xfb   :  { %v398_v24 = vmax.f32 %v296_v23, 0.0  ;;  %v963_v25 = vpop.f32.mrb[16].mxu0 }
  0xfc   :  { %v311_v27 = vadd.f32 %v963_v25, %v1262_v41  ;;  %v305_v28 = vpop.f32.mrb[17].mxu0 }
  0xfd   :  { %v306_v29 = vadd.f32 %v1262_v41, %v305_v28  ;;  %1014 = vmatprep.mubr.msk.f32.mxu1 %vm427_vm1, %v398_v24 }
  0xfe   :  { %1015 = vmatmul.mubr.msk.f32.gmra.mrb[14].mxu1 %vm427_vm1, %v399_v26  ;;  %v401_v32 = vmax.f32 %v311_v27, 0.0 }
  0xff   :  { %v400_v30 = vmax.f32 %v306_v29, 0.0  ;;  %v966_v31 = vpop.f32.mrb[18].mxu0 }
 0x100   :  { %v321_v33 = vadd.f32 %v966_v31, %v1262_v41  ;;  %v315_v34 = vpop.f32.mrb[19].mxu0 }
 0x101   :  { %v316_v35 = vadd.f32 %v1262_v41, %v315_v34  ;;  %1017 = vmatprep.mubr.msk.f32.mxu1 %vm427_vm1, %v400_v30 }
 0x102   :  { %1018 = vmatmul.mubr.msk.f32.gmra.mrb[16].mxu1 %vm427_vm1, %v401_v32  ;;  %v403_v38 = vmax.f32 %v321_v33, 0.0 }
 0x103   :  { %v402_v36 = vmax.f32 %v316_v35, 0.0  ;;  %v969_v37 = vpop.f32.mrb[20].mxu0 }
 0x104   :  { %v331_v39 = vadd.f32 %v969_v37, %v1262_v41  ;;  %v325_v40 = vpop.f32.mrb[21].mxu0 }
 0x105   :  { %v326_v42 = vadd.f32 %v1262_v41, %v325_v40  ;;  %1020 = vmatprep.mubr.msk.f32.mxu1 %vm427_vm1, %v402_v36 }
 0x106   :  { %1021 = vmatmul.mubr.msk.f32.gmra.mrb[18].mxu1 %vm427_vm1, %v403_v38  ;;  %v405_v45 = vmax.f32 %v331_v39, 0.0 }
 0x107   :  { %v404_v43 = vmax.f32 %v326_v42, 0.0  ;;  %v972_v44 = vpop.f32.mrb[22].mxu0 }
 0x108   :  { %v341_v46 = vadd.f32 %v972_v44, %v1262_v41  ;;  %v335_v47 = vpop.f32.mrb[23].mxu0 }
 0x109   :  { %v336_v48 = vadd.f32 %v1262_v41, %v335_v47  ;;  %1023 = vmatprep.mubr.msk.f32.mxu1 %vm427_vm1, %v404_v43 }
 0x10a   :  { %1024 = vmatmul.mubr.msk.f32.gmra.mrb[20].mxu1 %vm427_vm1, %v405_v45  ;;  %v407_v51 = vmax.f32 %v341_v46, 0.0 }
 0x10b   :  { %v406_v49 = vmax.f32 %v336_v48, 0.0  ;;  %v975_v50 = vpop.f32.mrb[24].mxu0 }
 0x10c   :  { %v351_v52 = vadd.f32 %v975_v50, %v1262_v41  ;;  %v345_v53 = vpop.f32.mrb[25].mxu0 }
 0x10d   :  { %v346_v54 = vadd.f32 %v1262_v41, %v345_v53  ;;  %1026 = vmatprep.mubr.msk.f32.mxu1 %vm427_vm1, %v406_v49 }
 0x10e   :  { %1027 = vmatmul.mubr.msk.f32.gmra.mrb[22].mxu1 %vm427_vm1, %v407_v51  ;;  %v409_v57 = vmax.f32 %v351_v52, 0.0 }
 0x10f   :  { %v408_v55 = vmax.f32 %v346_v54, 0.0  ;;  %v978_v56 = vpop.f32.mrb[26].mxu0 }
 0x110   :  { %v361_v58 = vadd.f32 %v978_v56, %v1262_v41  ;;  %v355_v59 = vpop.f32.mrb[27].mxu0 }
 0x111   :  { %v356_v60 = vadd.f32 %v1262_v41, %v355_v59  ;;  %1029 = vmatprep.mubr.msk.f32.mxu1 %vm427_vm1, %v408_v55 }
 0x112   :  { %1030 = vmatmul.mubr.msk.f32.gmra.mrb[24].mxu1 %vm427_vm1, %v409_v57  ;;  %v411_v63 = vmax.f32 %v361_v58, 0.0 }
 0x113   :  { %v410_v61 = vmax.f32 %v356_v60, 0.0  ;;  %v981_v62 = vpop.f32.mrb[28].mxu0 }
 0x114   :  { %v371_v0 = vadd.f32 %v981_v62, %v1262_v41  ;;  %v365_v1 = vpop.f32.mrb[29].mxu0 }
 0x115   :  { %v366_v2 = vadd.f32 %v1262_v41, %v365_v1  ;;  %1032 = vmatprep.mubr.msk.f32.mxu1 %vm427_vm1, %v410_v61 }
 0x116   :  { %1033 = vmatmul.mubr.msk.f32.gmra.mrb[26].mxu1 %vm427_vm1, %v411_v63  ;;  %v413_v5 = vmax.f32 %v371_v0, 0.0 }
 0x117   :  { %v412_v3 = vmax.f32 %v366_v2, 0.0  ;;  %v984_v4 = vpop.f32.mrb[30].mxu0 }
 0x118   :  { %v381_v6 = vadd.f32 %v984_v4, %v1262_v41  ;;  %v375_v7 = vpop.f32.mrb[31].mxu0 }
 0x119   :  { %v376_v8 = vadd.f32 %v1262_v41, %v375_v7  ;;  %1035 = vmatprep.mubr.msk.f32.mxu1 %vm427_vm1, %v412_v3 }
 0x11a   :  { %1036 = vmatmul.mubr.msk.f32.gmra.mrb[28].mxu1 %vm427_vm1, %v413_v5  ;;  %v415_v10 = vmax.f32 %v381_v6, 0.0 }
 0x11b   :  { %v414_v9 = vmax.f32 %v376_v8, 0.0 }
 0x11d   :  { %1038 = vmatprep.mubr.msk.f32.mxu1 %vm427_vm1, %v414_v9 }
 0x11e   :  { %1039 = vmatmul.mubr.msk.f32.gmra.mrb[30].mxu1 %vm427_vm1, %v415_v10 }
 0x1b5   :  { %v995_v12 = vpop.f32.mrb[0].mxu1 }
 0x1b6   :  { %v596_v13 = vadd.f32 %v995_v12, %v1331_v11  ;;  %v590_v14 = vpop.f32.mrb[1].mxu1 }
 0x1b7   :  { %v591_v41 = vadd.f32 %v1331_v11, %v590_v14 }
 0x1b8   :  { %750 = vst [vmem:[#allocation2 + $0x8] sm:$0xff] %v596_v13 }
 0x1b9   :  { %749 = vst [vmem:[#allocation2] sm:$0xff] %v591_v41  ;;  %v998_v15 = vpop.f32.mrb[2].mxu1 }
 0x1ba   :  { %v606_v16 = vadd.f32 %v998_v15, %v1331_v11  ;;  %v600_v17 = vpop.f32.mrb[3].mxu1 }
 0x1bb   :  { %v601_v18 = vadd.f32 %v1331_v11, %v600_v17 }
 0x1bc   :  { %752 = vst [vmem:[#allocation2 + $0x18] sm:$0xff] %v606_v16 }
 0x1bd   :  { %751 = vst [vmem:[#allocation2 + $0x10] sm:$0xff] %v601_v18  ;;  %v1001_v19 = vpop.f32.mrb[4].mxu1 }
 0x1be   :  { %v616_v20 = vadd.f32 %v1001_v19, %v1331_v11  ;;  %v610_v21 = vpop.f32.mrb[5].mxu1 }
 0x1bf   :  { %v611_v22 = vadd.f32 %v1331_v11, %v610_v21 }
 0x1c0   :  { %754 = vst [vmem:[#allocation2 + $0x28] sm:$0xff] %v616_v20 }
 0x1c1   :  { %753 = vst [vmem:[#allocation2 + $0x20] sm:$0xff] %v611_v22  ;;  %v1004_v23 = vpop.f32.mrb[6].mxu1 }
 0x1c2   :  { %v626_v24 = vadd.f32 %v1004_v23, %v1331_v11  ;;  %v620_v25 = vpop.f32.mrb[7].mxu1 }
 0x1c3   :  { %v621_v26 = vadd.f32 %v1331_v11, %v620_v25 }
 0x1c4   :  { %756 = vst [vmem:[#allocation2 + $0x38] sm:$0xff] %v626_v24 }
 0x1c5   :  { %755 = vst [vmem:[#allocation2 + $0x30] sm:$0xff] %v621_v26  ;;  %v1007_v27 = vpop.f32.mrb[8].mxu1 }
 0x1c6   :  { %v636_v28 = vadd.f32 %v1007_v27, %v1331_v11  ;;  %v630_v29 = vpop.f32.mrb[9].mxu1 }
 0x1c7   :  { %v631_v30 = vadd.f32 %v1331_v11, %v630_v29 }
 0x1c8   :  { %758 = vst [vmem:[#allocation2 + $0x48] sm:$0xff] %v636_v28 }
 0x1c9   :  { %757 = vst [vmem:[#allocation2 + $0x40] sm:$0xff] %v631_v30  ;;  %v1010_v31 = vpop.f32.mrb[10].mxu1 }
 0x1ca   :  { %v646_v32 = vadd.f32 %v1010_v31, %v1331_v11  ;;  %v640_v33 = vpop.f32.mrb[11].mxu1 }
 0x1cb   :  { %v641_v34 = vadd.f32 %v1331_v11, %v640_v33 }
 0x1cc   :  { %760 = vst [vmem:[#allocation2 + $0x58] sm:$0xff] %v646_v32 }
 0x1cd   :  { %759 = vst [vmem:[#allocation2 + $0x50] sm:$0xff] %v641_v34  ;;  %v1013_v35 = vpop.f32.mrb[12].mxu1 }
 0x1ce   :  { %v656_v36 = vadd.f32 %v1013_v35, %v1331_v11  ;;  %v650_v37 = vpop.f32.mrb[13].mxu1 }
 0x1cf   :  { %v651_v38 = vadd.f32 %v1331_v11, %v650_v37 }
 0x1d0   :  { %762 = vst [vmem:[#allocation2 + $0x68] sm:$0xff] %v656_v36 }
 0x1d1   :  { %761 = vst [vmem:[#allocation2 + $0x60] sm:$0xff] %v651_v38  ;;  %v1016_v39 = vpop.f32.mrb[14].mxu1 }
 0x1d2   :  { %v666_v40 = vadd.f32 %v1016_v39, %v1331_v11  ;;  %v660_v42 = vpop.f32.mrb[15].mxu1 }
 0x1d3   :  { %v661_v43 = vadd.f32 %v1331_v11, %v660_v42 }
 0x1d4   :  { %764 = vst [vmem:[#allocation2 + $0x78] sm:$0xff] %v666_v40 }
 0x1d5   :  { %763 = vst [vmem:[#allocation2 + $0x70] sm:$0xff] %v661_v43  ;;  %v1019_v44 = vpop.f32.mrb[16].mxu1 }
 0x1d6   :  { %v676_v45 = vadd.f32 %v1019_v44, %v1331_v11  ;;  %v670_v46 = vpop.f32.mrb[17].mxu1 }
 0x1d7   :  { %v671_v47 = vadd.f32 %v1331_v11, %v670_v46 }
 0x1d8   :  { %766 = vst [vmem:[#allocation2 + $0x88] sm:$0xff] %v676_v45 }
 0x1d9   :  { %765 = vst [vmem:[#allocation2 + $0x80] sm:$0xff] %v671_v47  ;;  %v1022_v48 = vpop.f32.mrb[18].mxu1 }
 0x1da   :  { %v686_v49 = vadd.f32 %v1022_v48, %v1331_v11  ;;  %v680_v50 = vpop.f32.mrb[19].mxu1 }
 0x1db   :  { %v681_v51 = vadd.f32 %v1331_v11, %v680_v50 }
 0x1dc   :  { %768 = vst [vmem:[#allocation2 + $0x98] sm:$0xff] %v686_v49 }
 0x1dd   :  { %767 = vst [vmem:[#allocation2 + $0x90] sm:$0xff] %v681_v51  ;;  %v1025_v52 = vpop.f32.mrb[20].mxu1 }
 0x1de   :  { %v696_v53 = vadd.f32 %v1025_v52, %v1331_v11  ;;  %v690_v54 = vpop.f32.mrb[21].mxu1 }
 0x1df   :  { %v691_v55 = vadd.f32 %v1331_v11, %v690_v54 }
 0x1e0   :  { %770 = vst [vmem:[#allocation2 + $0xa8] sm:$0xff] %v696_v53 }
 0x1e1   :  { %769 = vst [vmem:[#allocation2 + $0xa0] sm:$0xff] %v691_v55  ;;  %v1028_v56 = vpop.f32.mrb[22].mxu1 }
 0x1e2   :  { %v706_v57 = vadd.f32 %v1028_v56, %v1331_v11  ;;  %v700_v58 = vpop.f32.mrb[23].mxu1 }
 0x1e3   :  { %v701_v59 = vadd.f32 %v1331_v11, %v700_v58 }
 0x1e4   :  { %772 = vst [vmem:[#allocation2 + $0xb8] sm:$0xff] %v706_v57 }
 0x1e5   :  { %771 = vst [vmem:[#allocation2 + $0xb0] sm:$0xff] %v701_v59  ;;  %v1031_v60 = vpop.f32.mrb[24].mxu1 }
 0x1e6   :  { %v716_v61 = vadd.f32 %v1031_v60, %v1331_v11  ;;  %v710_v62 = vpop.f32.mrb[25].mxu1 }
 0x1e7   :  { %v711_v63 = vadd.f32 %v1331_v11, %v710_v62 }
 0x1e8   :  { %774 = vst [vmem:[#allocation2 + $0xc8] sm:$0xff] %v716_v61 }
 0x1e9   :  { %773 = vst [vmem:[#allocation2 + $0xc0] sm:$0xff] %v711_v63  ;;  %v1034_v0 = vpop.f32.mrb[26].mxu1 }
 0x1ea   :  { %v726_v1 = vadd.f32 %v1034_v0, %v1331_v11  ;;  %v720_v2 = vpop.f32.mrb[27].mxu1 }
 0x1eb   :  { %v721_v3 = vadd.f32 %v1331_v11, %v720_v2 }
 0x1ec   :  { %776 = vst [vmem:[#allocation2 + $0xd8] sm:$0xff] %v726_v1 }
 0x1ed   :  { %775 = vst [vmem:[#allocation2 + $0xd0] sm:$0xff] %v721_v3  ;;  %v1037_v4 = vpop.f32.mrb[28].mxu1 }
 0x1ee   :  { %v736_v5 = vadd.f32 %v1037_v4, %v1331_v11  ;;  %v730_v6 = vpop.f32.mrb[29].mxu1 }
 0x1ef   :  { %v731_v7 = vadd.f32 %v1331_v11, %v730_v6 }
 0x1f0   :  { %778 = vst [vmem:[#allocation2 + $0xe8] sm:$0xff] %v736_v5 }
 0x1f1   :  { %777 = vst [vmem:[#allocation2 + $0xe0] sm:$0xff] %v731_v7  ;;  %v1040_v8 = vpop.f32.mrb[30].mxu1 }
 0x1f2   :  { %v746_v9 = vadd.f32 %v1040_v8, %v1331_v11  ;;  %v740_v10 = vpop.f32.mrb[31].mxu1 }
 0x1f3   :  { %v741_v12 = vadd.f32 %v1331_v11, %v740_v10 }
 0x1f4   :  { %780 = vst [vmem:[#allocation2 + $0xf8] sm:$0xff] %v746_v9 }
 0x1f5   :  { %779 = vst [vmem:[#allocation2 + $0xf0] sm:$0xff] %v741_v12 }
 0x1f6   :  { %1067 = shalt.err (!%p1064_p4)
}
 0x1f7   :  { %s1068_s21 = scalar_lea.hbm %s1382_s5, 4096 }
 0x1f8   :  { %p1069_p5 = scmp.ne.s32.totalorder %s1382_s5, %s1068_s21  ;;  %p1072_p6 = scmp.lt.u32.totalorder %s1068_s21, %s1382_s5 }
 0x1fa   :  { %p1074_p7 = pnand %p1072_p6, %p1069_p5 }
 0x1fc   :  { %1077 = shalt.err (!%p1074_p7)
}
 0x1fd   :  { %s1081_s26 = smov 128   ;;  %s1082_s27 = smov 8  }
 0x1fe   :  { %792 = dma.vmem_to_hbm [thread:$0]  %s787_s4, 4096, %s1382_s5, [#allocation3], %s1081_s26, %s1081_s26, %s1082_s27  }
 0x1ff   :  { %1078 = dma.done.wait [#allocation3], 4096  }
 0x200   :  { %1079 = vsyncadd [#allocation3], 4294963200 }
 0x201   :  { %796 = vsyncpa [#allocation3], 1 }

</bundles_post_ra>
